<compile_context>
chip_gen: v7x
topology: tpu7x:2x2x1
jax: 0.10.0
libtpu: 0.0.40
codegen_flags: <defaults>
</compile_context>

<pallas_src>
import numpy as np
import jax
import jax.numpy as jnp
from jax import lax
from jax.experimental import pallas as pl
from jax.experimental.pallas import tpu as pltpu


def qnet_kernel(ids_ref,                     # int32 [SEL, 1]: [actions | targets | -1 mean rows]
                x_ref, wl1_ref, bl1_ref,     # input_node_linear [N,D], lin1 [D,D], [1,D]
                w1_ref, b1_ref,              # linear_1 [2D,H], [1,H]
                wo_ref, bo_ref,              # linear_out [H,D], [1,D]
                out_ref):                    # output [Bp, D] (pred broadcast across lanes)
    N, D = x_ref.shape
    Bp = out_ref.shape[0]
    SEL = ids_ref.shape[0]

    # Shared node embedding: relu(lin1(input_node_linear)) -- computed once,
    # kept as a value (no VMEM scratch round-trip).
    h = jnp.dot(x_ref[...], wl1_ref[...], preferred_element_type=jnp.float32)
    h = jnp.maximum(h + bl1_ref[...], 0.0)                                 # (N, D)

    # Selector matmul: action gathers, target gathers and the graph mean in a
    # single MXU pass.  Rows with id == -1 become uniform 1/N (mean) rows;
    # rows with id in [0, N) become one-hot; anything else is an all-zero row
    # (so bad indices can never read out of bounds).
    col = lax.broadcasted_iota(jnp.int32, (SEL, N), 1)                     # (SEL, N)
    ids = ids_ref[...]                                                     # (SEL, 1)
    sel = jnp.where(ids < 0, jnp.float32(1.0 / N),
                    (col == ids).astype(jnp.float32))                      # (SEL, N)
    gathered = jnp.dot(sel, h, preferred_element_type=jnp.float32)         # (SEL, D)

    node_rows = gathered[0:Bp, :]                                          # (Bp, D)
    tgt_rows = gathered[Bp:2 * Bp, :]                                      # (Bp, D)
    graph_embed = gathered[2 * Bp:2 * Bp + 1, :]                           # (1, D)

    # Batched per-graph tail:
    #   hid = relu(cat([node_row, graph_embed]) @ W1 + b1)
    #       = relu(node_rows @ W1_top + (graph_embed @ W1_bot + b1))
    w1_top = w1_ref[0:D, :]
    w1_bot = w1_ref[D:2 * D, :]
    g_hid = jnp.dot(graph_embed, w1_bot,
                    preferred_element_type=jnp.float32) + b1_ref[...]      # (1, H)
    hid = jnp.maximum(
        jnp.dot(node_rows, w1_top, preferred_element_type=jnp.float32) + g_hid,
        0.0)                                                               # (Bp, H)
    raw = jnp.dot(hid, wo_ref[...],
                  preferred_element_type=jnp.float32) + bo_ref[...]        # (Bp, D)

    # bilin_q: per-row dot(raw_pred, target_embed); one unmasked lane-dense store.
    pred = jnp.sum(raw * tgt_rows, axis=1, keepdims=True)                  # (Bp, 1)
    out_ref[...] = jnp.broadcast_to(pred, out_ref.shape)


def qnet_forward(target_nodes, actions, x, wl1, bl1, w1, b1, wo, bo):
    N, D = x.shape
    B = target_nodes.shape[0]
    Bp = max(8, ((B + 7) // 8) * 8)          # pad batch rows to a sublane multiple
    SEL = 2 * Bp + 8                         # action rows | target rows | mean rows

    pad = Bp - B
    act_p = jnp.concatenate(
        [actions.astype(jnp.int32), jnp.zeros((pad,), jnp.int32)]) if pad else actions.astype(jnp.int32)
    tgt_p = jnp.concatenate(
        [target_nodes.astype(jnp.int32), jnp.zeros((pad,), jnp.int32)]) if pad else target_nodes.astype(jnp.int32)
    ids = jnp.concatenate(
        [act_p, tgt_p, jnp.full((8,), -1, jnp.int32)]).reshape(SEL, 1)

    out = pl.pallas_call(
        qnet_kernel,
        out_shape=jax.ShapeDtypeStruct((Bp, D), jnp.float32),
        # No grid: every operand is a single full-array VMEM block, invoked once
        # (nothing to pipeline, no double-buffering overhead).
    )(ids, x, wl1, bl1, w1, b1, wo, bo)

    # list_pred: one scalar Q-value per graph (bilin_q=True -> mm gives [1,1]).
    return out[:B, 0:1]


def reference_forward(target_nodes, actions, x, wl1, bl1, w1, b1, wo, bo):
    preds = []
    for i in range(target_nodes.shape[0]):
        h = jax.nn.relu(x @ wl1 + bl1[0])                      # relu(lin1(node_embed))
        target_embed = h[target_nodes[i]]                      # [D]
        graph_embed = jnp.mean(h, axis=0)                      # [D]
        node_row = h[actions[i]]                               # [D]
        esa = jnp.concatenate([node_row, graph_embed])         # [2D]
        hid = jax.nn.relu(esa @ w1 + b1[0])                    # [H]
        raw = hid @ wo + bo[0]                                 # [D]
        preds.append(jnp.dot(raw, target_embed))
    return jnp.stack(preds)[:, None]                           # [B, 1]


if __name__ == "__main__":
    # args: latent_dim=128 (lin1 is hard-coded Linear(128,128)), bilin_q=True,
    #       mlp_hidden=128
    D = 128      # embed_dim / latent_dim
    H = 128      # mlp_hidden
    N = 16       # number of graph nodes
    B = 4        # batch of (target_node, graph) states

    key = jax.random.PRNGKey(0)
    ks = jax.random.split(key, 8)
    scale = 0.1
    x   = jax.random.normal(ks[0], (N, D), jnp.float32)              # input_node_linear
    wl1 = jax.random.normal(ks[1], (D, D), jnp.float32) * scale      # lin1 (pre-transposed)
    bl1 = jax.random.normal(ks[2], (1, D), jnp.float32) * scale
    w1  = jax.random.normal(ks[3], (2 * D, H), jnp.float32) * scale  # linear_1
    b1  = jax.random.normal(ks[4], (1, H), jnp.float32) * scale
    wo  = jax.random.normal(ks[5], (H, D), jnp.float32) * scale      # linear_out
    bo  = jax.random.normal(ks[6], (1, D), jnp.float32) * scale

    target_nodes = jnp.array([3, 7, 0, 12], dtype=jnp.int32)
    actions      = jnp.array([5, 2, 9, 1], dtype=jnp.int32)

    list_pred = qnet_forward(target_nodes, actions, x, wl1, bl1, w1, b1, wo, bo)
    list_pred = jax.block_until_ready(list_pred)

    ref = reference_forward(target_nodes, actions, x, wl1, bl1, w1, b1, wo, bo)
    np.testing.assert_allclose(np.asarray(list_pred), np.asarray(ref),
                               rtol=1e-4, atol=1e-4)
    print("KERNEL_OK")
</pallas_src>

<mosaic_0001>
module attributes {stable_mosaic.version = 11 : i64} {
  func.func @qnet_kernel(%arg0: memref<24x1xi32, #tpu.memory_space<vmem>>, %arg1: memref<16x128xf32, #tpu.memory_space<vmem>>, %arg2: memref<128x128xf32, #tpu.memory_space<vmem>>, %arg3: memref<1x128xf32, #tpu.memory_space<vmem>>, %arg4: memref<256x128xf32, #tpu.memory_space<vmem>>, %arg5: memref<1x128xf32, #tpu.memory_space<vmem>>, %arg6: memref<128x128xf32, #tpu.memory_space<vmem>>, %arg7: memref<1x128xf32, #tpu.memory_space<vmem>>, %arg8: memref<8x128xf32, #tpu.memory_space<vmem>>) attributes {dimension_semantics = [], scalar_prefetch = 0 : i64, scratch_operands = 0 : i64, tpu.core_type = #tpu.core_type<tc>} {
    %c0 = arith.constant 0 : index
    %c0_0 = arith.constant 0 : index
    %0 = vector.load %arg1[%c0, %c0_0] : memref<16x128xf32, #tpu.memory_space<vmem>>, vector<16x128xf32>
    %c0_1 = arith.constant 0 : index
    %c0_2 = arith.constant 0 : index
    %1 = vector.load %arg2[%c0_1, %c0_2] : memref<128x128xf32, #tpu.memory_space<vmem>>, vector<128x128xf32>
    %cst = arith.constant dense<0.000000e+00> : vector<16x128xf32>
    %2 = tpu.matmul %0, %1, %cst {dimension_numbers = #tpu.dot_dimension_numbers<[1], [0], [0], [1], [0, 0, 1, 1], [], []>} : vector<16x128xf32>, vector<128x128xf32>, vector<16x128xf32> -> vector<16x128xf32>
    %c0_3 = arith.constant 0 : index
    %c0_4 = arith.constant 0 : index
    %3 = vector.load %arg3[%c0_3, %c0_4] : memref<1x128xf32, #tpu.memory_space<vmem>>, vector<1x128xf32>
    %4 = vector.broadcast %3 : vector<1x128xf32> to vector<16x128xf32>
    %5 = arith.addf %2, %4 : vector<16x128xf32>
    %cst_5 = arith.constant 0.000000e+00 : f32
    %6 = vector.broadcast %cst_5 : f32 to vector<16x128xf32>
    %7 = arith.maximumf %5, %6 : vector<16x128xf32>
    %8 = tpu.iota {dimensions = array<i32: 1>} : vector<24x16xi32>
    %c0_6 = arith.constant 0 : index
    %c0_7 = arith.constant 0 : index
    %9 = vector.load %arg0[%c0_6, %c0_7] : memref<24x1xi32, #tpu.memory_space<vmem>>, vector<24x1xi32>
    %c0_i32 = arith.constant 0 : i32
    %10 = vector.broadcast %c0_i32 : i32 to vector<24x1xi32>
    %11 = arith.cmpi slt, %9, %10 : vector<24x1xi32>
    %12 = vector.broadcast %9 : vector<24x1xi32> to vector<24x16xi32>
    %13 = arith.cmpi eq, %8, %12 : vector<24x16xi32>
    %14 = arith.extui %13 : vector<24x16xi1> to vector<24x16xi32>
    %15 = arith.sitofp %14 : vector<24x16xi32> to vector<24x16xf32>
    %cst_8 = arith.constant 6.250000e-02 : f32
    %16 = vector.shape_cast %11 : vector<24x1xi1> to vector<24x1xi1>
    %17 = vector.broadcast %16 : vector<24x1xi1> to vector<24x16xi1>
    %18 = vector.broadcast %cst_8 : f32 to vector<24x16xf32>
    %19 = arith.select %17, %18, %15 : vector<24x16xi1>, vector<24x16xf32>
    %cst_9 = arith.constant dense<0.000000e+00> : vector<24x128xf32>
    %20 = tpu.matmul %19, %7, %cst_9 {dimension_numbers = #tpu.dot_dimension_numbers<[1], [0], [0], [1], [0, 0, 1, 1], [], []>} : vector<24x16xf32>, vector<16x128xf32>, vector<24x128xf32> -> vector<24x128xf32>
    %21 = vector.extract_strided_slice %20 {offsets = [0, 0], sizes = [8, 128], strides = [1, 1]} : vector<24x128xf32> to vector<8x128xf32>
    %22 = vector.extract_strided_slice %20 {offsets = [8, 0], sizes = [8, 128], strides = [1, 1]} : vector<24x128xf32> to vector<8x128xf32>
    %23 = vector.extract_strided_slice %20 {offsets = [16, 0], sizes = [1, 128], strides = [1, 1]} : vector<24x128xf32> to vector<1x128xf32>
    %c0_10 = arith.constant 0 : index
    %c0_11 = arith.constant 0 : index
    %24 = vector.load %arg4[%c0_10, %c0_11] : memref<256x128xf32, #tpu.memory_space<vmem>>, vector<128x128xf32>
    %c128 = arith.constant 128 : index
    %c0_12 = arith.constant 0 : index
    %25 = vector.load %arg4[%c128, %c0_12] : memref<256x128xf32, #tpu.memory_space<vmem>>, vector<128x128xf32>
    %cst_13 = arith.constant dense<0.000000e+00> : vector<1x128xf32>
    %26 = tpu.matmul %23, %25, %cst_13 {dimension_numbers = #tpu.dot_dimension_numbers<[1], [0], [0], [1], [0, 0, 1, 1], [], []>} : vector<1x128xf32>, vector<128x128xf32>, vector<1x128xf32> -> vector<1x128xf32>
    %c0_14 = arith.constant 0 : index
    %c0_15 = arith.constant 0 : index
    %27 = vector.load %arg5[%c0_14, %c0_15] : memref<1x128xf32, #tpu.memory_space<vmem>>, vector<1x128xf32>
    %28 = arith.addf %26, %27 : vector<1x128xf32>
    %cst_16 = arith.constant dense<0.000000e+00> : vector<8x128xf32>
    %29 = tpu.matmul %21, %24, %cst_16 {dimension_numbers = #tpu.dot_dimension_numbers<[1], [0], [0], [1], [0, 0, 1, 1], [], []>} : vector<8x128xf32>, vector<128x128xf32>, vector<8x128xf32> -> vector<8x128xf32>
    %30 = vector.broadcast %28 : vector<1x128xf32> to vector<8x128xf32>
    %31 = arith.addf %29, %30 : vector<8x128xf32>
    %cst_17 = arith.constant 0.000000e+00 : f32
    %32 = vector.broadcast %cst_17 : f32 to vector<8x128xf32>
    %33 = arith.maximumf %31, %32 : vector<8x128xf32>
    %c0_18 = arith.constant 0 : index
    %c0_19 = arith.constant 0 : index
    %34 = vector.load %arg6[%c0_18, %c0_19] : memref<128x128xf32, #tpu.memory_space<vmem>>, vector<128x128xf32>
    %cst_20 = arith.constant dense<0.000000e+00> : vector<8x128xf32>
    %35 = tpu.matmul %33, %34, %cst_20 {dimension_numbers = #tpu.dot_dimension_numbers<[1], [0], [0], [1], [0, 0, 1, 1], [], []>} : vector<8x128xf32>, vector<128x128xf32>, vector<8x128xf32> -> vector<8x128xf32>
    %c0_21 = arith.constant 0 : index
    %c0_22 = arith.constant 0 : index
    %36 = vector.load %arg7[%c0_21, %c0_22] : memref<1x128xf32, #tpu.memory_space<vmem>>, vector<1x128xf32>
    %37 = vector.broadcast %36 : vector<1x128xf32> to vector<8x128xf32>
    %38 = arith.addf %35, %37 : vector<8x128xf32>
    %39 = arith.mulf %38, %22 : vector<8x128xf32>
    %cst_23 = arith.constant dense<0.000000e+00> : vector<8xf32>
    %40 = vector.multi_reduction <add>, %39, %cst_23 [1] : vector<8x128xf32> to vector<8xf32>
    %41 = vector.shape_cast %40 : vector<8xf32> to vector<8x1xf32>
    %42 = vector.shape_cast %41 : vector<8x1xf32> to vector<8x1xf32>
    %43 = vector.broadcast %42 : vector<8x1xf32> to vector<8x128xf32>
    %c0_24 = arith.constant 0 : index
    %c0_25 = arith.constant 0 : index
    %44 = vector.load %arg8[%c0_24, %c0_25] : memref<8x128xf32, #tpu.memory_space<vmem>>, vector<8x128xf32>
    tpu.vector_store %arg8[%c0_24, %c0_25], %43 {strides = array<i32>} : memref<8x128xf32, #tpu.memory_space<vmem>>, vector<8x128xf32>,
    return
  }
}

</mosaic_0001>

<bundles_post_ra>
// kernel: tpu_custom_call.1
= control target key start
LH: loop header
LB: loop body
LE: loop exit
PB: predicated region body
PF: predicated region fallthrough
CT: control target
= control target key end

     0   :  { %13 = vsyncpa [#allocation3], 0  ;;  %s1234_s0 = inlined_call_operand.vmem [shape: s32[24,1], index: 0, kind: input, shape index: {}]   ;;  %s1235_s1 = inlined_call_operand.vmem [shape: f32[16,128], index: 1, kind: input, shape index: {}]   ;;  %s1236_s2 = inlined_call_operand.hbm [shape: f32[128,128], index: 2, kind: input, shape index: {}]   ;;  %s1237_s3 = inlined_call_operand.vmem [shape: f32[1,128], index: 3, kind: input, shape index: {}]   ;;  %s1238_s4 = inlined_call_operand.hbm [shape: f32[256,128], index: 4, kind: input, shape index: {}]   ;;  %s1239_s5 = inlined_call_operand.vmem [shape: f32[1,128], index: 5, kind: input, shape index: {}]   ;;  %s1240_s6 = inlined_call_operand.hbm [shape: f32[128,128], index: 6, kind: input, shape index: {}]   ;;  %s1241_s7 = inlined_call_operand.vmem [shape: f32[1,128], index: 7, kind: input, shape index: {}]   ;;  %s1242_s8 = inlined_call_operand.hbm [shape: f32[8,128], index: 8, kind: output, shape index: {}]  }
   0x1   :  { %14 = vsyncpa [#allocation6], 0 }
   0x2   :  { %15 = vsyncpa [#allocation4], 0  ;;  %s1046_s27 = smov [#allocation5]   ;;  %s1047_s29 = smov [#allocation2]  }
   0x3   :  { %s39_s28 = sshll.u32 %s1046_s27, 4  ;;  %s25_s30 = sshll.u32 %s1047_s29, 4  ;;  %s40_s28 = int_to_ptr.vmem [resolvable:$true] %s39_s28  ;;  %s1101_s30 = int_to_ptr.vmem [resolvable:$true] %s25_s30 }
   0x4   :  { %s952_s11 = scalar_lea.hbm %s1238_s4, 4096 }
   0x5   :  { %p953_p0 = scmp.ne.s32.totalorder %s1238_s4, %s952_s11  ;;  %p956_p1 = scmp.lt.u32.totalorder %s952_s11, %s1238_s4 }
   0x7   :  { %p958_p2 = pnand %p956_p1, %p953_p0 }
   0x9   :  { %961 = shalt.err (!%p958_p2)
}
   0xa   :  { %s962_s16 = scalar_lea.vmem %s40_s28, 4096  ;;  %p967_p4 = scmp.lt.s32.totalorder %s40_s28, %s40_s28 }
   0xb   :  { %p963_p3 = scmp.ne.s32.totalorder %s40_s28, %s962_s16  ;;  %p968_p5 = scmp.lt.s32.totalorder %s962_s16, %s962_s16 }
   0xd   :  { %p969_p6 = por %p968_p5, %p967_p4 }
   0xf   :  { %p970_p7 = pnand %p969_p6, %p963_p3 }
  0x11   :  { %973 = shalt.err (!%p970_p7)
}
  0x12   :  { %s1048_s17 = smov 128   ;;  %s1049_s18 = smov 8  }
  0x13   :  { %45 = dma.hbm_to_vmem [thread:$0]  %s1238_s4, 4096, %s40_s28, [#allocation6], %s1048_s17, %s1048_s17, %s1049_s18  }
  0x14   :  { %s974_s23 = scalar_lea.hbm %s1236_s2, 2048 }
  0x15   :  { %p975_p8 = scmp.ne.s32.totalorder %s1236_s2, %s974_s23  ;;  %p978_p9 = scmp.lt.u32.totalorder %s974_s23, %s1236_s2 }
  0x17   :  { %p980_p10 = pnand %p978_p9, %p975_p8 }
  0x19   :  { %983 = shalt.err (!%p980_p10)
}
  0x1a   :  { %s984_s29 = scalar_lea.vmem %s1101_s30, 2048  ;;  %p989_p12 = scmp.lt.s32.totalorder %s1101_s30, %s1101_s30 }
  0x1b   :  { %p985_p11 = scmp.ne.s32.totalorder %s1101_s30, %s984_s29  ;;  %p990_p13 = scmp.lt.s32.totalorder %s984_s29, %s984_s29 }
  0x1d   :  { %p991_p0 = por %p990_p13, %p989_p12 }
  0x1f   :  { %p992_p1 = pnand %p991_p0, %p985_p11 }
  0x21   :  { %995 = shalt.err (!%p992_p1)
}
  0x22   :  { %31 = dma.hbm_to_vmem [thread:$0]  %s1236_s2, 2048, %s1101_s30, [#allocation3], %s1048_s17, %s1048_s17, %s1049_s18  }
  0x23   :  { %s1050_s9 = smov [#allocation7]   ;;  %s996_s13 = scalar_lea.hbm %s1240_s6, 2048 }
  0x24   :  { %s53_s10 = sshll.u32 %s1050_s9, 4  ;;  %p997_p2 = scmp.ne.s32.totalorder %s1240_s6, %s996_s13  ;;  %s54_s10 = int_to_ptr.vmem [resolvable:$true] %s53_s10 }
  0x25   :  { %p1000_p3 = scmp.lt.u32.totalorder %s996_s13, %s1240_s6 }
  0x27   :  { %p1002_p4 = pnand %p1000_p3, %p997_p2 }
  0x29   :  { %1005 = shalt.err (!%p1002_p4)
}
  0x2a   :  { %s1006_s20 = scalar_lea.vmem %s54_s10, 2048  ;;  %p1011_p6 = scmp.lt.s32.totalorder %s54_s10, %s54_s10 }
  0x2b   :  { %p1007_p5 = scmp.ne.s32.totalorder %s54_s10, %s1006_s20  ;;  %p1012_p7 = scmp.lt.s32.totalorder %s1006_s20, %s1006_s20 }
  0x2d   :  { %p1013_p8 = por %p1012_p7, %p1011_p6 }
  0x2f   :  { %p1014_p9 = pnand %p1013_p8, %p1007_p5 }
  0x31   :  { %1017 = shalt.err (!%p1014_p9)
}
  0x32   :  { %59 = dma.hbm_to_vmem [thread:$0]  %s1240_s6, 2048, %s54_s10, [#allocation6], %s1048_s17, %s1048_s17, %s1049_s18  }
  0x33   :  { %1040 = dma.done.wait [#allocation3], 2048  }
  0x34   :  { %1041 = vsyncadd [#allocation3], 4294965248 }
  0x35   :  { %1042 = dma.done.wait [#allocation6], 6144  }
  0x36   :  { %1043 = vsyncadd [#allocation6], 4294961152  ;;  %v1051_v0 = vmov 0   ;;  %v73_v1 = vld [vmem:[#allocation2] sm:$0xff]  ;;  %v74_v2 = vld [vmem:[#allocation2 + $0x8] sm:$0xff]  ;;  %v1052_v33 = vmov 0.0|0.0   ;;  %v173_v59 = vlaneseq }
  0x37   :  { %950 = vset.pattern.permute.xlu0 %v1051_v0  ;;  %951 = vset.pattern.permute.xlu1 %v1051_v0  ;;  %v75_v3 = vld [vmem:[#allocation2 + $0x10] sm:$0xff]  ;;  %v833_v4 = vpack.c.bf16 %v74_v2, %v73_v1  ;;  %v76_v5 = vld [vmem:[#allocation2 + $0x18] sm:$0xff]  ;;  %v77_v7 = vld [vmem:[#allocation2 + $0x20] sm:$0xff]  ;;  %vm1053_vm3 = vmmov 0   ;;  %v1054_v34 = vmov 0.0   ;;  %vm217_vm7 = vcmask 130048  }
  0x38   :  { %v837_v6 = vpack.c.bf16 %v76_v5, %v75_v3  ;;  %v78_v8 = vld [vmem:[#allocation2 + $0x28] sm:$0xff]  ;;  %v79_v10 = vld [vmem:[#allocation2 + $0x30] sm:$0xff]  ;;  %v80_v11 = vld [vmem:[#allocation2 + $0x38] sm:$0xff]  ;;  %865 = vmatprep.subr.bf16.mxu1 %v1052_v33  ;;  %719 = vmatprep.mubr.msk.f32.mxu1 %vm1053_vm3, %v1054_v34  ;;  %v174_v62 = vand.u32 127, %v173_v59  ;;  %s1055_s9 = smov [#allocation8]  }
  0x39   :  { %834 = vmatprep.subr.bf16.mxu0 %v833_v4  ;;  %v841_v9 = vpack.c.bf16 %v78_v8, %v77_v7  ;;  %v71_v12 = vld [vmem:[%s1235_s1] sm:$0xff]  ;;  %v176_v14 = vld [vmem:[%s1234_s0 + $0x8] sm:$0xff]  ;;  %v177_v15 = vld [vmem:[%s1234_s0 + $0x10] sm:$0xff]  ;;  %v845_v18 = vpack.c.bf16 %v80_v11, %v79_v10  ;;  %s588_s10 = sshll.u32 %s1055_s9, 4  ;;  %s589_s10 = int_to_ptr.vmem [resolvable:$true] %s588_s10 }
  0x3a   :  { %836 = vmatpush3.bf16.msra.mxu0 %v833_v4  ;;  %712 = vmatprep.mubr.f32.mxu0 %v71_v12  ;;  %v175_v13 = vld [vmem:[%s1234_s0] sm:$0xff]  ;;  %vm179_vm1 = vcmp.lt.s32.totalorder %v176_v14, 0  ;;  %vm180_vm2 = vcmp.lt.s32.totalorder %v177_v15, 0  ;;  %v81_v19 = vld [vmem:[#allocation2 + $0x40] sm:$0xff]  ;;  %v82_v20 = vld [vmem:[#allocation2 + $0x48] sm:$0xff]  ;;  %p1023_p11 = scmp.lt.s32.totalorder %s589_s10, %s589_s10 }
  0x3b   :  { %838 = vmatprep.subr.bf16.mxu0 %v837_v6  ;;  %182 = vperm.xlu0 %950, %v175_v13   ;;  %vm178_vm0 = vcmp.lt.s32.totalorder %v175_v13, 0  ;;  %v200_v17 = vsel %vm179_vm1, 1, %v1051_v0  ;;  %v201_v21 = vsel %vm180_vm2, 1, %v1051_v0  ;;  %v849_v22 = vpack.c.bf16 %v82_v20, %v81_v19  ;;  %v83_v23 = vld [vmem:[#allocation2 + $0x50] sm:$0xff]  ;;  %v84_v24 = vld [vmem:[#allocation2 + $0x58] sm:$0xff]  ;;  %v85_v26 = vld [vmem:[#allocation2 + $0x60] sm:$0xff] }
  0x3c   :  { %185 = vperm.xlu1 %951, %v176_v14   ;;  %v199_v16 = vsel %vm178_vm0, 1, %v1051_v0  ;;  %v853_v25 = vpack.c.bf16 %v84_v24, %v83_v23  ;;  %v86_v27 = vld [vmem:[#allocation2 + $0x68] sm:$0xff]  ;;  %v87_v29 = vld [vmem:[#allocation2 + $0x70] sm:$0xff]  ;;  %v88_v30 = vld [vmem:[#allocation2 + $0x78] sm:$0xff] }
  0x3d   :  { %v857_v28 = vpack.c.bf16 %v86_v27, %v85_v26  ;;  %v861_v31 = vpack.c.bf16 %v88_v30, %v87_v29  ;;  %v72_v32 = vld [vmem:[%s1235_s1 + $0x8] sm:$0xff]  ;;  %v307_v35 = vld [vmem:[#allocation5] sm:$0xff]  ;;  %v308_v36 = vld [vmem:[#allocation5 + $0x8] sm:$0xff] }
  0x3e   :  { %840 = vmatpush3.bf16.msra.mxu0 %v837_v6  ;;  %v309_v37 = vld [vmem:[#allocation5 + $0x10] sm:$0xff]  ;;  %v893_v38 = vpack.c.bf16 %v308_v36, %v307_v35  ;;  %v310_v39 = vld [vmem:[#allocation5 + $0x18] sm:$0xff]  ;;  %v311_v41 = vld [vmem:[#allocation5 + $0x20] sm:$0xff] }
  0x3f   :  { %842 = vmatprep.subr.bf16.mxu0 %v841_v9  ;;  %203 = vperm.xlu0 %950, %v199_v16   ;;  %v896_v40 = vpack.c.bf16 %v310_v39, %v309_v37  ;;  %v312_v42 = vld [vmem:[#allocation5 + $0x28] sm:$0xff]  ;;  %v313_v44 = vld [vmem:[#allocation5 + $0x30] sm:$0xff]  ;;  %v314_v45 = vld [vmem:[#allocation5 + $0x38] sm:$0xff] }
  0x40   :  { %206 = vperm.xlu1 %951, %v200_v17   ;;  %v899_v43 = vpack.c.bf16 %v312_v42, %v311_v41  ;;  %v902_v46 = vpack.c.bf16 %v314_v45, %v313_v44  ;;  %v315_v47 = vld [vmem:[#allocation5 + $0x40] sm:$0xff]  ;;  %v316_v48 = vld [vmem:[#allocation5 + $0x48] sm:$0xff]  ;;  %v317_v50 = vld [vmem:[#allocation5 + $0x50] sm:$0xff] }
  0x41   :  { %v905_v49 = vpack.c.bf16 %v316_v48, %v315_v47  ;;  %v318_v51 = vld [vmem:[#allocation5 + $0x58] sm:$0xff]  ;;  %v319_v53 = vld [vmem:[#allocation5 + $0x60] sm:$0xff]  ;;  %v320_v54 = vld [vmem:[#allocation5 + $0x68] sm:$0xff] }
  0x42   :  { %844 = vmatpush3.bf16.msra.mxu0 %v841_v9  ;;  %v908_v52 = vpack.c.bf16 %v318_v51, %v317_v50  ;;  %v911_v55 = vpack.c.bf16 %v320_v54, %v319_v53  ;;  %v321_v56 = vld [vmem:[#allocation5 + $0x70] sm:$0xff]  ;;  %v322_v57 = vld [vmem:[#allocation5 + $0x78] sm:$0xff]  ;;  %v323_v7 = vld [vmem:[#allocation5 + $0x80] sm:$0xff] }
  0x43   :  { %846 = vmatprep.subr.bf16.mxu0 %v845_v18  ;;  %188 = vperm.xlu0 %950, %v177_v15   ;;  %v914_v58 = vpack.c.bf16 %v322_v57, %v321_v56  ;;  %v598_v61 = vld [vmem:[%s1237_s3] ss:$0 sm:$0xff]  ;;  %v324_v8 = vld [vmem:[#allocation5 + $0x88] sm:$0xff]  ;;  %v326_v15 = vld [vmem:[#allocation5 + $0x98] sm:$0xff] }
  0x44   :  { %209 = vperm.xlu1 %951, %v201_v21   ;;  %v869_v12 = vpack.c.bf16 %v324_v8, %v323_v7  ;;  %v325_v14 = vld [vmem:[#allocation5 + $0x90] sm:$0xff]  ;;  %v327_v20 = vld [vmem:[#allocation5 + $0xa0] sm:$0xff]  ;;  %v328_v21 = vld [vmem:[#allocation5 + $0xa8] sm:$0xff] }
  0x45   :  { %v872_v19 = vpack.c.bf16 %v326_v15, %v325_v14  ;;  %v875_v24 = vpack.c.bf16 %v328_v21, %v327_v20  ;;  %v330_v26 = vld [vmem:[#allocation5 + $0xb8] sm:$0xff]  ;;  %v331_v29 = vld [vmem:[#allocation5 + $0xc0] sm:$0xff]  ;;  %v332_v30 = vld [vmem:[#allocation5 + $0xc8] sm:$0xff] }
  0x46   :  { %848 = vmatpush3.bf16.msra.mxu0 %v845_v18  ;;  %v334_v35 = vld [vmem:[#allocation5 + $0xd8] sm:$0xff]  ;;  %v335_v37 = vld [vmem:[#allocation5 + $0xe0] sm:$0xff]  ;;  %v487_v50 = vld [vmem:[#allocation7 + $0x10] sm:$0xff] }
  0x47   :  { %850 = vmatprep.subr.bf16.mxu0 %v849_v22  ;;  %v338_v41 = vld [vmem:[#allocation5 + $0xf8] sm:$0xff]  ;;  %v485_v45 = vld [vmem:[#allocation7] sm:$0xff]  ;;  %v490_v56 = vld [vmem:[#allocation7 + $0x28] sm:$0xff] }
  0x48   :  { %v488_v51 = vld [vmem:[#allocation7 + $0x18] sm:$0xff] }
  0x49   :  { %v920_v54 = vpack.c.bf16 %v488_v51, %v487_v50  ;;  %v500_v7 = vld [vmem:[#allocation7 + $0x78] sm:$0xff] }
  0x4a   :  { %852 = vmatpush3.bf16.msra.mxu0 %v849_v22 }
  0x4b   :  { %854 = vmatprep.subr.bf16.mxu0 %v853_v25 }
  0x4e   :  { %856 = vmatpush3.bf16.msra.mxu0 %v853_v25  ;;  %v329_v25 = vld [vmem:[#allocation5 + $0xb0] sm:$0xff] }
  0x4f   :  { %858 = vmatprep.subr.bf16.mxu0 %v857_v28 }
  0x52   :  { %860 = vmatpush3.bf16.msra.mxu0 %v857_v28  ;;  %v878_v28 = vpack.c.bf16 %v330_v26, %v329_v25 }
  0x53   :  { %862 = vmatprep.subr.bf16.mxu0 %v861_v31 }
  0x56   :  { %864 = vmatpush3.bf16.msra.mxu0 %v861_v31  ;;  %v881_v31 = vpack.c.bf16 %v332_v30, %v331_v29 }
  0x57   :  { %892 = vmatprep.subr.bf16.mxu0 %v1052_v33 }
  0x59   :  { %713 = vmatmul.mubr.f32.vlgmr.msra.gmra.mrb[0].mxu0 %v72_v32  ;;  %v333_v32 = vld [vmem:[#allocation5 + $0xd0] sm:$0xff] }
  0x5a   :  { %795 = vmatprep.mubr.msk.f32.mxu0 %vm1053_vm3, %v1054_v34  ;;  %894 = vmatpush3.bf16.msra.mxu0 %v893_v38  ;;  %v884_v36 = vpack.c.bf16 %v334_v35, %v333_v32  ;;  %v336_v38 = vld [vmem:[#allocation5 + $0xe8] sm:$0xff] }
  0x5b   :  { %895 = vmatprep.subr.bf16.mxu0 %v1052_v33  ;;  %v887_v39 = vpack.c.bf16 %v336_v38, %v335_v37 }
  0x5e   :  { %897 = vmatpush3.bf16.msra.mxu0 %v896_v40  ;;  %v337_v40 = vld [vmem:[#allocation5 + $0xf0] sm:$0xff] }
  0x5f   :  { %898 = vmatprep.subr.bf16.mxu0 %v1052_v33  ;;  %v890_v42 = vpack.c.bf16 %v338_v41, %v337_v40 }
  0x62   :  { %900 = vmatpush3.bf16.msra.mxu0 %v899_v43 }
  0x63   :  { %901 = vmatprep.subr.bf16.mxu0 %v1052_v33 }
  0x66   :  { %903 = vmatpush3.bf16.msra.mxu0 %v902_v46  ;;  %v486_v46 = vld [vmem:[#allocation7 + $0x8] sm:$0xff] }
  0x67   :  { %904 = vmatprep.subr.bf16.mxu0 %v1052_v33 }
  0x6a   :  { %906 = vmatpush3.bf16.msra.mxu0 %v905_v49  ;;  %v917_v49 = vpack.c.bf16 %v486_v46, %v485_v45 }
  0x6b   :  { %907 = vmatprep.subr.bf16.mxu0 %v1052_v33 }
  0x6e   :  { %909 = vmatpush3.bf16.msra.mxu0 %v908_v52 }
  0x6f   :  { %910 = vmatprep.subr.bf16.mxu0 %v1052_v33 }
  0x72   :  { %912 = vmatpush3.bf16.msra.mxu0 %v911_v55  ;;  %v489_v55 = vld [vmem:[#allocation7 + $0x20] sm:$0xff] }
  0x73   :  { %913 = vmatprep.subr.bf16.mxu0 %v1052_v33  ;;  %v923_v57 = vpack.c.bf16 %v490_v56, %v489_v55 }
  0x76   :  { %915 = vmatpush3.bf16.msra.mxu0 %v914_v58  ;;  %v491_v58 = vld [vmem:[#allocation7 + $0x30] sm:$0xff] }
  0xba   :  { %v183_v60 = vpop.permute.xlu0 %182 }
  0xbb   :  { %v186_v63 = vpop.permute.xlu1 %185  ;;  %vm190_vm4 = vcmp.eq.s32.totalorder %v174_v62, %v183_v60  ;;  %v492_v60 = vld [vmem:[#allocation7 + $0x38] sm:$0xff] }
  0xbc   :  { %v599_v11 = vsel %vm190_vm4, 1.0, %v1054_v34  ;;  %vm191_vm6 = vcmp.eq.s32.totalorder %v174_v62, %v186_v63  ;;  %v494_v63 = vld [vmem:[#allocation7 + $0x48] sm:$0xff] }
  0xbd   :  { %v600_v17 = vsel %vm191_vm6, 1.0, %v1054_v34 }
  0xbe   :  { %v204_v4 = vpop.permute.xlu0 %203 }
  0xbf   :  { %v207_v9 = vpop.permute.xlu1 %206  ;;  %vm211_vm5 = vcmp.eq.s32.totalorder %v204_v4, 1  ;;  %v498_v4 = vld [vmem:[#allocation7 + $0x68] sm:$0xff] }
  0xc0   :  { %v214_v16 = vsel %vm211_vm5, 0.0625, %v599_v11  ;;  %vm212_vm8 = vcmp.eq.s32.totalorder %v207_v9, 1  ;;  %v411_v11 = vshrl.u32 %v173_v59, 7 }
  0xc1   :  { %v215_v22 = vsel %vm212_vm8, 0.0625, %v600_v17 }
  0xc2   :  { %v189_v13 = vpop.permute.xlu0 %188 }
  0xc3   :  { %vm192_vm9 = vcmp.eq.s32.totalorder %v174_v62, %v189_v13  ;;  %v210_v18 = vpop.permute.xlu1 %209  ;;  %v493_v62 = vld [vmem:[#allocation7 + $0x40] sm:$0xff]  ;;  %v412_v13 = vsub.s32 0, %v411_v11 }
  0xc4   :  { %v601_v23 = vsel %vm192_vm9, 1.0, %v1054_v34  ;;  %vm213_vm10 = vcmp.eq.s32.totalorder %v210_v18, 1 }
  0xc5   :  { %v216_v27 = vsel %vm213_vm10, 0.0625, %v601_v23 }
 0x12c   :  { %v714_v0 = vpop.f32.mrb[0].mxu0 }
 0x12d   :  { %v168_v1 = vadd.f32 %v714_v0, %v598_v61  ;;  %v162_v2 = vpop.f32.mrb[1].mxu0  ;;  %v495_v0 = vld [vmem:[#allocation7 + $0x50] sm:$0xff] }
 0x12e   :  { %v163_v3 = vadd.f32 %v598_v61, %v162_v2  ;;  %v926_v61 = vpack.c.bf16 %v492_v60, %v491_v58 }
 0x12f   :  { %v172_v5 = vmax.f32 %v168_v1, 0.0  ;;  %v496_v1 = vld [vmem:[#allocation7 + $0x58] sm:$0xff] }
 0x130   :  { %v171_v6 = vmax.f32 %v163_v3, 0.0  ;;  %v932_v2 = vpack.c.bf16 %v496_v1, %v495_v0  ;;  %v497_v3 = vld [vmem:[#allocation7 + $0x60] sm:$0xff] }
 0x132   :  { %v866_v10 = vpack.c.bf16 %v172_v5, %v171_v6  ;;  %v935_v5 = vpack.c.bf16 %v498_v4, %v497_v3  ;;  %v499_v6 = vld [vmem:[#allocation7 + $0x70] sm:$0xff] }
 0x133   :  { %v938_v8 = vpack.c.bf16 %v500_v7, %v499_v6 }
 0x134   :  { %867 = vmatpush3.bf16.msra.mxu1 %v866_v10 }
 0x135   :  { %868 = vmatprep.subr.bf16.mxu1 %v1052_v33 }
 0x137   :  { %720 = vmatmul.mubr.msk.f32.vlgmr.msra.gmra.mrb[0].mxu1 %vm217_vm7, %v214_v16 }
 0x138   :  { %722 = vmatprep.mubr.msk.f32.mxu1 %vm1053_vm3, %v1054_v34  ;;  %870 = vmatpush3.bf16.msra.mxu1 %v869_v12  ;;  %v339_v12 = vld [vmem:[%s1239_s5] sm:$0x1]  ;;  %s1018_s5 = scalar_lea.vmem %s589_s10, 128 }
 0x139   :  { %871 = vmatprep.subr.bf16.mxu1 %v1052_v33  ;;  %p1019_p10 = scmp.ne.s32.totalorder %s589_s10, %s1018_s5  ;;  %p1024_p12 = scmp.lt.s32.totalorder %s1018_s5, %s1018_s5 }
 0x13b   :  { %723 = vmatmul.mubr.msk.f32.gmra.mrb[2].mxu1 %vm217_vm7, %v215_v22  ;;  %p1025_p13 = por %p1024_p12, %p1023_p11 }
 0x13c   :  { %725 = vmatprep.mubr.msk.f32.mxu1 %vm1053_vm3, %v1054_v34  ;;  %873 = vmatpush3.bf16.msra.mxu1 %v872_v19 }
 0x13d   :  { %874 = vmatprep.subr.bf16.mxu1 %v1052_v33  ;;  %p1026_p0 = pnand %p1025_p13, %p1019_p10 }
 0x13f   :  { %726 = vmatmul.mubr.msk.f32.gmra.mrb[4].mxu1 %vm217_vm7, %v216_v27 }
 0x140   :  { %876 = vmatpush3.bf16.msra.mxu1 %v875_v24  ;;  %760 = vmatprep.mubr.msk.f32.mxu1 %vm1053_vm3, %v1054_v34 }
 0x141   :  { %877 = vmatprep.subr.bf16.mxu1 %v1052_v33 }
 0x144   :  { %879 = vmatpush3.bf16.msra.mxu1 %v878_v28 }
 0x145   :  { %880 = vmatprep.subr.bf16.mxu1 %v1052_v33 }
 0x148   :  { %882 = vmatpush3.bf16.msra.mxu1 %v881_v31 }
 0x149   :  { %883 = vmatprep.subr.bf16.mxu1 %v1052_v33 }
 0x14c   :  { %885 = vmatpush3.bf16.msra.mxu1 %v884_v36 }
 0x14d   :  { %886 = vmatprep.subr.bf16.mxu1 %v1052_v33 }
 0x150   :  { %888 = vmatpush3.bf16.msra.mxu1 %v887_v39 }
 0x151   :  { %889 = vmatprep.subr.bf16.mxu1 %v1052_v33 }
 0x154   :  { %891 = vmatpush3.bf16.msra.mxu1 %v890_v42 }
 0x155   :  { %916 = vmatprep.subr.bf16.mxu1 %v1052_v33 }
 0x20a   :  { %v293_v43 = vpop.f32.mrb[0].mxu1 }
 0x20b   :  { %v721_v44 = vpop.f32.mrb[1].mxu1  ;;  %796 = vmatmul.mubr.f32.vlgmr.msra.gmra.mrb[2].mxu0 %v293_v43 }
 0x20e   :  { %v298_v47 = vpop.f32.mrb[2].mxu1 }
 0x20f   :  { %v724_v48 = vpop.f32.mrb[3].mxu1 }
 0x212   :  { %v303_v52 = vpop.f32.mrb[4].mxu1 }
 0x213   :  { %v727_v53 = vpop.f32.mrb[5].mxu1  ;;  %761 = vmatmul.mubr.f32.vlgmr.msra.gmra.mrb[6].mxu1 %v303_v52 }
 0x214   :  { %918 = vmatpush3.bf16.msra.mxu1 %v917_v49  ;;  %830 = vmatprep.mubr.msk.f32.mxu1 %vm1053_vm3, %v1054_v34  ;;  %v929_v34 = vpack.c.bf16 %v494_v63, %v493_v62 }
 0x215   :  { %919 = vmatprep.subr.bf16.mxu1 %v1052_v33 }
 0x218   :  { %921 = vmatpush3.bf16.msra.mxu1 %v920_v54 }
 0x219   :  { %922 = vmatprep.subr.bf16.mxu1 %v1052_v33 }
 0x21c   :  { %924 = vmatpush3.bf16.msra.mxu1 %v923_v57 }
 0x21d   :  { %925 = vmatprep.subr.bf16.mxu1 %v1052_v33 }
 0x220   :  { %927 = vmatpush3.bf16.msra.mxu1 %v926_v61 }
 0x221   :  { %928 = vmatprep.subr.bf16.mxu1 %v1052_v33 }
 0x224   :  { %930 = vmatpush3.bf16.msra.mxu1 %v929_v34 }
 0x225   :  { %931 = vmatprep.subr.bf16.mxu1 %v1052_v33 }
 0x228   :  { %933 = vmatpush3.bf16.msra.mxu1 %v932_v2 }
 0x229   :  { %934 = vmatprep.subr.bf16.mxu1 %v1052_v33 }
 0x22c   :  { %936 = vmatpush3.bf16.msra.mxu1 %v935_v5 }
 0x22d   :  { %937 = vmatprep.subr.bf16.mxu1 %v1052_v33  ;;  %v605_v33 = vld [vmem:[%s1241_s7] ss:$0 sm:$0xff] }
 0x230   :  { %939 = vmatpush3.bf16.msra.mxu1 %v938_v8 }
 0x2de   :  { %v480_v9 = vpop.f32.mrb[2].mxu0 }
 0x2df   :  { %v797_v10 = vpop.f32.mrb[3].mxu0 }
 0x2e6   :  { %v406_v14 = vpop.f32.mrb[6].mxu1 }
 0x2e7   :  { %v407_v15 = vadd.f32 %v406_v14, %v339_v12  ;;  %v762_v16 = vpop.f32.mrb[7].mxu1 }
 0x2e9   :  { %v413_v17 = vrot.slane %v407_v15, %v412_v13 }
 0x2eb   :  { %v481_v18 = vadd.f32 %v480_v9, %v413_v17 }
 0x2ed   :  { %v484_v19 = vmax.f32 %v481_v18, 0.0 }
 0x2ef   :  { %831 = vmatmul.mubr.f32.vlgmr.msra.gmra.mrb[8].mxu1 %v484_v19 }
 0x3c2   :  { %v574_v20 = vpop.f32.mrb[8].mxu1 }
 0x3c3   :  { %v575_v21 = vadd.f32 %v605_v33, %v574_v20  ;;  %v832_v22 = vpop.f32.mrb[9].mxu1 }
 0x3c5   :  { %v578_v59 = vmul.f32 %v575_v21, %v298_v47 }
 0x3c7   :  { %579 = vadd.xlane.f32.xlu0 %v578_v59 }
 0x454   :  { %v580_v23 = vpop.xlane.xlu0 %579 }
 0x455   :  { %581 = vst [vmem:[#allocation8] sm:$0xff] %v580_v23 }
 0x456   :  { %1029 = shalt.err (!%p1026_p0)
}
 0x457   :  { %s1030_s7 = scalar_lea.hbm %s1242_s8, 128 }
 0x458   :  { %p1031_p1 = scmp.ne.s32.totalorder %s1242_s8, %s1030_s7  ;;  %p1034_p2 = scmp.lt.u32.totalorder %s1030_s7, %s1242_s8 }
 0x45a   :  { %p1036_p3 = pnand %p1034_p2, %p1031_p1 }
 0x45c   :  { %1039 = shalt.err (!%p1036_p3)
}
 0x45d   :  { %591 = dma.vmem_to_hbm [thread:$0]  %s589_s10, 128, %s1242_s8, [#allocation4]  }
 0x45e   :  { %1044 = dma.done.wait [#allocation4], 128  }
 0x45f   :  { %1045 = vsyncadd [#allocation4], 4294967168 }
 0x460   :  { %595 = vsyncpa [#allocation3], 1 }
 0x461   :  { %596 = vsyncpa [#allocation6], 1 }
 0x462   :  { %597 = vsyncpa [#allocation4], 1 }

</bundles_post_ra>
